<compile_context>
chip_gen: v5e
topology: v5e:2x2
jax: 0.10.0
libtpu: 0.0.40
codegen_flags: <defaults>
</compile_context>

<pallas_src>
import functools

import jax
import jax.numpy as jnp
from jax.experimental import pallas as pl
from jax.experimental.pallas import tpu as pltpu

# MXU operand dtype (accumulation is always f32). Set to jnp.float32 to disable.
MXU_DTYPE = jnp.bfloat16


def gnn_fused_kernel(
    a_in_ref,      # (TB, N, N)    mxu dtype
    a_out_ref,     # (TB, N, N)    mxu dtype
    h_ref,         # (TB*N, D)     f32
    w_edge_ref,    # (2, D, D)     mxu dtype   [in, out] edge weights, pre-transposed
    b_edge_ref,    # (2, D)        f32         [b_edge_in, b_edge_out]
    b_ah_ref,      # (2, D)        f32         [b_iah, b_oah]
    w_ih_in_ref,   # (3, D, D)     mxu dtype   per-gate (r,i,n) blocks acting on input_in
    w_ih_out_ref,  # (3, D, D)     mxu dtype   per-gate blocks acting on input_out
    b_ih_ref,      # (3, D)        f32
    w_hh_ref,      # (3, D, D)     mxu dtype
    b_hh_ref,      # (3, D)        f32
    out_ref,       # (TB*N, D)     f32
    *,
    n_nodes,
    step,
    mxu_dtype,
):
    TB = a_in_ref.shape[0]
    N = n_nodes
    D = h_ref.shape[1]
    f32 = jnp.float32

    # Hoist all weight / bias / adjacency loads out of the fused step loop.
    a_in = a_in_ref[...]
    a_out = a_out_ref[...]
    w_in = w_edge_ref[0]
    w_out = w_edge_ref[1]
    b_in = b_edge_ref[0:1]
    b_out = b_edge_ref[1:2]
    b_iah = b_ah_ref[0:1]
    b_oah = b_ah_ref[1:2]
    w_ih_in = [w_ih_in_ref[g] for g in range(3)]
    w_ih_out = [w_ih_out_ref[g] for g in range(3)]
    w_hh = [w_hh_ref[g] for g in range(3)]
    b_ih = [b_ih_ref[g:g + 1] for g in range(3)]
    b_hh = [b_hh_ref[g:g + 1] for g in range(3)]

    hf = h_ref[...]  # (TB*N, D) f32 state kept resident across the fused steps.

    for _ in range(step):  # `step` is static -> unrolled
        hm = hf.astype(mxu_dtype)

        # linear_edge_in / linear_edge_out on the flattened (TB*N, D) view.
        edge_in = jnp.dot(hm, w_in, preferred_element_type=f32) + b_in
        edge_out = jnp.dot(hm, w_out, preferred_element_type=f32) + b_out

        # Per-graph propagation: A_in[b] @ edge_in[b] and A_out[b] @ edge_out[b].
        ein3 = edge_in.astype(mxu_dtype).reshape(TB, N, D)
        eout3 = edge_out.astype(mxu_dtype).reshape(TB, N, D)
        input_in = (
            jnp.einsum("bij,bjd->bid", a_in, ein3,
                       preferred_element_type=f32).reshape(TB * N, D) + b_iah
        )
        input_out = (
            jnp.einsum("bij,bjd->bid", a_out, eout3,
                       preferred_element_type=f32).reshape(TB * N, D) + b_oah
        )

        ii = input_in.astype(mxu_dtype)
        io = input_out.astype(mxu_dtype)

        # GRU-style gates with per-gate weight blocks -> no lane-axis concat / slicing.
        def gate(g):
            gi = (
                jnp.dot(ii, w_ih_in[g], preferred_element_type=f32)
                + jnp.dot(io, w_ih_out[g], preferred_element_type=f32)
                + b_ih[g]
            )
            gh = jnp.dot(hm, w_hh[g], preferred_element_type=f32) + b_hh[g]
            return gi, gh

        gi_r, gh_r = gate(0)
        gi_i, gh_i = gate(1)
        gi_n, gh_n = gate(2)

        resetgate = jax.nn.sigmoid(gi_r + gh_r)
        inputgate = jax.nn.sigmoid(gi_i + gh_i)
        newgate = jnp.tanh(gi_n + resetgate * gh_n)
        hf = newgate + inputgate * (hf - newgate)

    out_ref[...] = hf.astype(out_ref.dtype)


def make_gnn_call(B, N, D, batch_tile, step, mxu_dtype):
    assert B % batch_tile == 0
    kern = functools.partial(gnn_fused_kernel, n_nodes=N, step=step, mxu_dtype=mxu_dtype)
    grid = (B // batch_tile,)
    rows = batch_tile * N
    full2 = lambda b: (0, 0)
    full3 = lambda b: (0, 0, 0)
    return pl.pallas_call(
        kern,
        out_shape=jax.ShapeDtypeStruct((B * N, D), jnp.float32),
        grid=grid,
        in_specs=[
            pl.BlockSpec((batch_tile, N, N), lambda b: (b, 0, 0)),   # A_in
            pl.BlockSpec((batch_tile, N, N), lambda b: (b, 0, 0)),   # A_out
            pl.BlockSpec((rows, D), lambda b: (b, 0)),               # hidden (flattened)
            pl.BlockSpec((2, D, D), full3),                          # w_edge
            pl.BlockSpec((2, D), full2),                             # b_edge
            pl.BlockSpec((2, D), full2),                             # b_ah
            pl.BlockSpec((3, D, D), full3),                          # w_ih_in
            pl.BlockSpec((3, D, D), full3),                          # w_ih_out
            pl.BlockSpec((3, D), full2),                             # b_ih
            pl.BlockSpec((3, D, D), full3),                          # w_hh
            pl.BlockSpec((3, D), full2),                             # b_hh
        ],
        out_specs=pl.BlockSpec((rows, D), lambda b: (b, 0)),
        compiler_params=pltpu.CompilerParams(dimension_semantics=("parallel",)),
    )


def pack_params(params, D, mxu_dtype=MXU_DTYPE):
    """Convert PyTorch-layout params to the kernel layout (per-gate split, pre-transposed)."""
    f32 = jnp.float32
    w_edge = jnp.stack([params["w_edge_in"].T, params["w_edge_out"].T]).astype(mxu_dtype)
    b_edge = jnp.stack([params["b_edge_in"], params["b_edge_out"]]).astype(f32)
    b_ah = jnp.stack([params["b_iah"], params["b_oah"]]).astype(f32)
    # w_ih: (3D, 2D) -> w_ih.T: (2D, 3D) -> (in/out, gate, D, D)
    w_ih_t = params["w_ih"].T.reshape(2, D, 3, D).transpose(0, 2, 1, 3)
    w_ih_in = w_ih_t[0].astype(mxu_dtype)     # (3, D, D)
    w_ih_out = w_ih_t[1].astype(mxu_dtype)    # (3, D, D)
    # w_hh: (3D, D) -> w_hh.T: (D, 3D) -> (gate, D, D)
    w_hh = params["w_hh"].T.reshape(D, 3, D).transpose(1, 0, 2).astype(mxu_dtype)
    return {
        "w_edge": w_edge,
        "b_edge": b_edge,
        "b_ah": b_ah,
        "w_ih_in": w_ih_in,
        "w_ih_out": w_ih_out,
        "b_ih": params["b_ih"].reshape(3, D).astype(f32),
        "w_hh": w_hh,
        "b_hh": params["b_hh"].reshape(3, D).astype(f32),
    }


def gnn_forward(A, hidden, packed, *, step=1, mxu_dtype=MXU_DTYPE, batch_tile=None):
    B, N, D = hidden.shape
    if batch_tile is None:
        batch_tile = B
    # Split A in the wrapper so the kernel never slices the lane axis at offset N.
    A_in = A[:, :, :N].astype(mxu_dtype)
    A_out = A[:, :, N:2 * N].astype(mxu_dtype)
    h_flat = hidden.reshape(B * N, D).astype(jnp.float32)
    call = make_gnn_call(B, N, D, batch_tile, step, mxu_dtype)
    out_flat = call(
        A_in, A_out, h_flat,
        packed["w_edge"], packed["b_edge"], packed["b_ah"],
        packed["w_ih_in"], packed["w_ih_out"], packed["b_ih"],
        packed["w_hh"], packed["b_hh"],
    )
    return out_flat.reshape(B, N, D)


def gnn_forward_ref(A, hidden, params, step=1, matmul_dtype=jnp.float32):
    """Pure-JAX reference with PyTorch-layout params and PyTorch semantics.

    `matmul_dtype` lets the reference mimic the kernel's MXU-operand casts
    (f32 accumulation either way). With float32 it is the exact f32 reference.
    """
    B, N, D = hidden.shape
    f32 = jnp.float32
    c = lambda x: x.astype(matmul_dtype)
    A_in = c(A[:, :, :N])
    A_out = c(A[:, :, N:2 * N])
    w_in_t = c(params["w_edge_in"].T)
    w_out_t = c(params["w_edge_out"].T)
    w_ih_t = c(params["w_ih"].T)   # (2D, 3D)
    w_hh_t = c(params["w_hh"].T)   # (D, 3D)
    for _ in range(step):
        h = hidden
        edge_in = jnp.matmul(c(h), w_in_t, preferred_element_type=f32) + params["b_edge_in"]
        edge_out = jnp.matmul(c(h), w_out_t, preferred_element_type=f32) + params["b_edge_out"]
        input_in = jnp.matmul(A_in, c(edge_in), preferred_element_type=f32) + params["b_iah"]
        input_out = jnp.matmul(A_out, c(edge_out), preferred_element_type=f32) + params["b_oah"]
        inputs = jnp.concatenate([input_in, input_out], axis=2)
        gi = jnp.matmul(c(inputs), w_ih_t, preferred_element_type=f32) + params["b_ih"]
        gh = jnp.matmul(c(h), w_hh_t, preferred_element_type=f32) + params["b_hh"]
        i_r, i_i, i_n = jnp.split(gi, 3, axis=2)
        h_r, h_i, h_n = jnp.split(gh, 3, axis=2)
        resetgate = jax.nn.sigmoid(i_r + h_r)
        inputgate = jax.nn.sigmoid(i_i + h_i)
        newgate = jnp.tanh(i_n + resetgate * h_n)
        hidden = newgate + inputgate * (h - newgate)
    return hidden


def init_params(key, D):
    """PyTorch-layout parameters (same shapes as the nn.Module)."""
    ks = jax.random.split(key, 10)
    s = 1.0 / (D ** 0.5)
    u = lambda k, shape: jax.random.uniform(k, shape, jnp.float32, -s, s)
    # NOTE: linear_edge_f exists in the module but is unused in forward -> omitted.
    return {
        "w_ih": u(ks[0], (3 * D, 2 * D)),
        "w_hh": u(ks[1], (3 * D, D)),
        "b_ih": u(ks[2], (3 * D,)),
        "b_hh": u(ks[3], (3 * D,)),
        "b_iah": u(ks[4], (D,)),
        "b_oah": u(ks[5], (D,)),
        "w_edge_in": u(ks[6], (D, D)),
        "b_edge_in": u(ks[7], (D,)),
        "w_edge_out": u(ks[8], (D, D)),
        "b_edge_out": u(ks[9], (D,)),
    }


if __name__ == "__main__":
    B, N, D = 2, 8, 32   # batch, n_nodes, embedding_dim
    step = 1

    key = jax.random.PRNGKey(0)
    k_a, k_h, k_p = jax.random.split(key, 3)

    A = jax.random.uniform(k_a, (B, N, 2 * N), jnp.float32)
    hidden = jax.random.normal(k_h, (B, N, D), jnp.float32)
    params = init_params(k_p, D)
    packed = pack_params(params, D, mxu_dtype=MXU_DTYPE)

    out = gnn_forward(A, hidden, packed, step=step, mxu_dtype=MXU_DTYPE)
    out = jax.block_until_ready(out)
    assert out.shape == (B, N, D)

    # Tight check against a reference using the same bf16-MXU / f32-accumulate math.
    ref_matched = gnn_forward_ref(A, hidden, params, step=step, matmul_dtype=MXU_DTYPE)
    d1 = float(jnp.max(jnp.abs(out - ref_matched)))
    assert jnp.allclose(out, ref_matched, atol=5e-3, rtol=5e-3), f"matched-ref max diff {d1}"

    # Loose sanity check against the exact f32 PyTorch-semantics reference
    # (difference is only the bf16 MXU operands).
    ref_f32 = gnn_forward_ref(A, hidden, params, step=step, matmul_dtype=jnp.float32)
    d2 = float(jnp.max(jnp.abs(out - ref_f32)))
    assert jnp.allclose(out, ref_f32, atol=1e-1, rtol=1e-1), f"f32-ref max diff {d2}"

    # Fused multi-step propagation (hidden never leaves the kernel between steps).
    out3 = jax.block_until_ready(gnn_forward(A, hidden, packed, step=3, mxu_dtype=MXU_DTYPE))
    ref3 = gnn_forward_ref(A, hidden, params, step=3, matmul_dtype=MXU_DTYPE)
    d3 = float(jnp.max(jnp.abs(out3 - ref3)))
    assert jnp.allclose(out3, ref3, atol=2e-2, rtol=2e-2), f"step=3 max diff {d3}"

    print("KERNEL_OK")
</pallas_src>

<mosaic_0001>
module attributes {stable_mosaic.version = 11 : i64} {
  func.func @gnn_fused_kernel(%arg0: i32, %arg1: memref<2x8x8xbf16, #tpu.memory_space<vmem>>, %arg2: memref<2x8x8xbf16, #tpu.memory_space<vmem>>, %arg3: memref<16x32xf32, #tpu.memory_space<vmem>>, %arg4: memref<2x32x32xbf16, #tpu.memory_space<vmem>>, %arg5: memref<2x32xf32, #tpu.memory_space<vmem>>, %arg6: memref<2x32xf32, #tpu.memory_space<vmem>>, %arg7: memref<3x32x32xbf16, #tpu.memory_space<vmem>>, %arg8: memref<3x32x32xbf16, #tpu.memory_space<vmem>>, %arg9: memref<3x32xf32, #tpu.memory_space<vmem>>, %arg10: memref<3x32x32xbf16, #tpu.memory_space<vmem>>, %arg11: memref<3x32xf32, #tpu.memory_space<vmem>>, %arg12: memref<16x32xf32, #tpu.memory_space<vmem>>) attributes {dimension_semantics = [#tpu.dimension_semantics<parallel>], iteration_bounds = array<i64: 1>, scalar_prefetch = 0 : i64, scratch_operands = 0 : i64, tpu.core_type = #tpu.core_type<tc>, window_params = [{transform_indices = @transform_0, window_bounds = array<i64: 2, 8, 8>}, {transform_indices = @transform_1, window_bounds = array<i64: 2, 8, 8>}, {transform_indices = @transform_2, window_bounds = array<i64: 16, 32>}, {pipeline_mode = #tpu.pipeline_mode<synchronous>, transform_indices = @transform_3, window_bounds = array<i64: 2, 32, 32>}, {pipeline_mode = #tpu.pipeline_mode<synchronous>, transform_indices = @transform_4, window_bounds = array<i64: 2, 32>}, {pipeline_mode = #tpu.pipeline_mode<synchronous>, transform_indices = @transform_5, window_bounds = array<i64: 2, 32>}, {pipeline_mode = #tpu.pipeline_mode<synchronous>, transform_indices = @transform_6, window_bounds = array<i64: 3, 32, 32>}, {pipeline_mode = #tpu.pipeline_mode<synchronous>, transform_indices = @transform_7, window_bounds = array<i64: 3, 32, 32>}, {pipeline_mode = #tpu.pipeline_mode<synchronous>, transform_indices = @transform_8, window_bounds = array<i64: 3, 32>}, {pipeline_mode = #tpu.pipeline_mode<synchronous>, transform_indices = @transform_9, window_bounds = array<i64: 3, 32, 32>}, {pipeline_mode = #tpu.pipeline_mode<synchronous>, transform_indices = @transform_10, window_bounds = array<i64: 3, 32>}, {transform_indices = @transform_11, window_bounds = array<i64: 16, 32>}]} {
    %c0 = arith.constant 0 : index
    %c0_0 = arith.constant 0 : index
    %c0_1 = arith.constant 0 : index
    %0 = vector.load %arg1[%c0, %c0_0, %c0_1] : memref<2x8x8xbf16, #tpu.memory_space<vmem>>, vector<2x8x8xbf16>
    %c0_2 = arith.constant 0 : index
    %c0_3 = arith.constant 0 : index
    %c0_4 = arith.constant 0 : index
    %1 = vector.load %arg2[%c0_2, %c0_3, %c0_4] : memref<2x8x8xbf16, #tpu.memory_space<vmem>>, vector<2x8x8xbf16>
    %c0_5 = arith.constant 0 : index
    %c0_6 = arith.constant 0 : index
    %c0_7 = arith.constant 0 : index
    %2 = vector.load %arg4[%c0_5, %c0_6, %c0_7] : memref<2x32x32xbf16, #tpu.memory_space<vmem>>, vector<1x32x32xbf16>
    %3 = vector.shape_cast %2 : vector<1x32x32xbf16> to vector<32x32xbf16>
    %c1 = arith.constant 1 : index
    %c0_8 = arith.constant 0 : index
    %c0_9 = arith.constant 0 : index
    %4 = vector.load %arg4[%c1, %c0_8, %c0_9] : memref<2x32x32xbf16, #tpu.memory_space<vmem>>, vector<1x32x32xbf16>
    %5 = vector.shape_cast %4 : vector<1x32x32xbf16> to vector<32x32xbf16>
    %c0_10 = arith.constant 0 : index
    %c0_11 = arith.constant 0 : index
    %6 = vector.load %arg5[%c0_10, %c0_11] : memref<2x32xf32, #tpu.memory_space<vmem>>, vector<1x32xf32>
    %c1_12 = arith.constant 1 : index
    %c0_13 = arith.constant 0 : index
    %7 = vector.load %arg5[%c1_12, %c0_13] : memref<2x32xf32, #tpu.memory_space<vmem>>, vector<1x32xf32>
    %c0_14 = arith.constant 0 : index
    %c0_15 = arith.constant 0 : index
    %8 = vector.load %arg6[%c0_14, %c0_15] : memref<2x32xf32, #tpu.memory_space<vmem>>, vector<1x32xf32>
    %c1_16 = arith.constant 1 : index
    %c0_17 = arith.constant 0 : index
    %9 = vector.load %arg6[%c1_16, %c0_17] : memref<2x32xf32, #tpu.memory_space<vmem>>, vector<1x32xf32>
    %c0_18 = arith.constant 0 : index
    %c0_19 = arith.constant 0 : index
    %c0_20 = arith.constant 0 : index
    %10 = vector.load %arg7[%c0_18, %c0_19, %c0_20] : memref<3x32x32xbf16, #tpu.memory_space<vmem>>, vector<1x32x32xbf16>
    %11 = vector.shape_cast %10 : vector<1x32x32xbf16> to vector<32x32xbf16>
    %c1_21 = arith.constant 1 : index
    %c0_22 = arith.constant 0 : index
    %c0_23 = arith.constant 0 : index
    %12 = vector.load %arg7[%c1_21, %c0_22, %c0_23] : memref<3x32x32xbf16, #tpu.memory_space<vmem>>, vector<1x32x32xbf16>
    %13 = vector.shape_cast %12 : vector<1x32x32xbf16> to vector<32x32xbf16>
    %c2 = arith.constant 2 : index
    %c0_24 = arith.constant 0 : index
    %c0_25 = arith.constant 0 : index
    %14 = vector.load %arg7[%c2, %c0_24, %c0_25] : memref<3x32x32xbf16, #tpu.memory_space<vmem>>, vector<1x32x32xbf16>
    %15 = vector.shape_cast %14 : vector<1x32x32xbf16> to vector<32x32xbf16>
    %c0_26 = arith.constant 0 : index
    %c0_27 = arith.constant 0 : index
    %c0_28 = arith.constant 0 : index
    %16 = vector.load %arg8[%c0_26, %c0_27, %c0_28] : memref<3x32x32xbf16, #tpu.memory_space<vmem>>, vector<1x32x32xbf16>
    %17 = vector.shape_cast %16 : vector<1x32x32xbf16> to vector<32x32xbf16>
    %c1_29 = arith.constant 1 : index
    %c0_30 = arith.constant 0 : index
    %c0_31 = arith.constant 0 : index
    %18 = vector.load %arg8[%c1_29, %c0_30, %c0_31] : memref<3x32x32xbf16, #tpu.memory_space<vmem>>, vector<1x32x32xbf16>
    %19 = vector.shape_cast %18 : vector<1x32x32xbf16> to vector<32x32xbf16>
    %c2_32 = arith.constant 2 : index
    %c0_33 = arith.constant 0 : index
    %c0_34 = arith.constant 0 : index
    %20 = vector.load %arg8[%c2_32, %c0_33, %c0_34] : memref<3x32x32xbf16, #tpu.memory_space<vmem>>, vector<1x32x32xbf16>
    %21 = vector.shape_cast %20 : vector<1x32x32xbf16> to vector<32x32xbf16>
    %c0_35 = arith.constant 0 : index
    %c0_36 = arith.constant 0 : index
    %c0_37 = arith.constant 0 : index
    %22 = vector.load %arg10[%c0_35, %c0_36, %c0_37] : memref<3x32x32xbf16, #tpu.memory_space<vmem>>, vector<1x32x32xbf16>
    %23 = vector.shape_cast %22 : vector<1x32x32xbf16> to vector<32x32xbf16>
    %c1_38 = arith.constant 1 : index
    %c0_39 = arith.constant 0 : index
    %c0_40 = arith.constant 0 : index
    %24 = vector.load %arg10[%c1_38, %c0_39, %c0_40] : memref<3x32x32xbf16, #tpu.memory_space<vmem>>, vector<1x32x32xbf16>
    %25 = vector.shape_cast %24 : vector<1x32x32xbf16> to vector<32x32xbf16>
    %c2_41 = arith.constant 2 : index
    %c0_42 = arith.constant 0 : index
    %c0_43 = arith.constant 0 : index
    %26 = vector.load %arg10[%c2_41, %c0_42, %c0_43] : memref<3x32x32xbf16, #tpu.memory_space<vmem>>, vector<1x32x32xbf16>
    %27 = vector.shape_cast %26 : vector<1x32x32xbf16> to vector<32x32xbf16>
    %c0_44 = arith.constant 0 : index
    %c0_45 = arith.constant 0 : index
    %28 = vector.load %arg9[%c0_44, %c0_45] : memref<3x32xf32, #tpu.memory_space<vmem>>, vector<1x32xf32>
    %c1_46 = arith.constant 1 : index
    %c0_47 = arith.constant 0 : index
    %29 = vector.load %arg9[%c1_46, %c0_47] : memref<3x32xf32, #tpu.memory_space<vmem>>, vector<1x32xf32>
    %c2_48 = arith.constant 2 : index
    %c0_49 = arith.constant 0 : index
    %30 = vector.load %arg9[%c2_48, %c0_49] : memref<3x32xf32, #tpu.memory_space<vmem>>, vector<1x32xf32>
    %c0_50 = arith.constant 0 : index
    %c0_51 = arith.constant 0 : index
    %31 = vector.load %arg11[%c0_50, %c0_51] : memref<3x32xf32, #tpu.memory_space<vmem>>, vector<1x32xf32>
    %c1_52 = arith.constant 1 : index
    %c0_53 = arith.constant 0 : index
    %32 = vector.load %arg11[%c1_52, %c0_53] : memref<3x32xf32, #tpu.memory_space<vmem>>, vector<1x32xf32>
    %c2_54 = arith.constant 2 : index
    %c0_55 = arith.constant 0 : index
    %33 = vector.load %arg11[%c2_54, %c0_55] : memref<3x32xf32, #tpu.memory_space<vmem>>, vector<1x32xf32>
    %c0_56 = arith.constant 0 : index
    %c0_57 = arith.constant 0 : index
    %34 = vector.load %arg3[%c0_56, %c0_57] : memref<16x32xf32, #tpu.memory_space<vmem>>, vector<16x32xf32>
    %35 = arith.truncf %34 : vector<16x32xf32> to vector<16x32xbf16>
    %cst = arith.constant dense<0.000000e+00> : vector<16x32xf32>
    %36 = tpu.matmul %35, %3, %cst {dimension_numbers = #tpu.dot_dimension_numbers<[1], [0], [0], [1], [0, 0, 1, 1], [], []>} : vector<16x32xbf16>, vector<32x32xbf16>, vector<16x32xf32> -> vector<16x32xf32>
    %37 = vector.broadcast %6 : vector<1x32xf32> to vector<16x32xf32>
    %38 = arith.addf %36, %37 : vector<16x32xf32>
    %cst_58 = arith.constant dense<0.000000e+00> : vector<16x32xf32>
    %39 = tpu.matmul %35, %5, %cst_58 {dimension_numbers = #tpu.dot_dimension_numbers<[1], [0], [0], [1], [0, 0, 1, 1], [], []>} : vector<16x32xbf16>, vector<32x32xbf16>, vector<16x32xf32> -> vector<16x32xf32>
    %40 = vector.broadcast %7 : vector<1x32xf32> to vector<16x32xf32>
    %41 = arith.addf %39, %40 : vector<16x32xf32>
    %42 = arith.truncf %38 : vector<16x32xf32> to vector<16x32xbf16>
    %43 = vector.shape_cast %42 : vector<16x32xbf16> to vector<2x8x32xbf16>
    %44 = arith.truncf %41 : vector<16x32xf32> to vector<16x32xbf16>
    %45 = vector.shape_cast %44 : vector<16x32xbf16> to vector<2x8x32xbf16>
    "tpu.trace_start"() <{level = 10 : i32, message = "bij,bjd->bid"}> : () -> ()
    %cst_59 = arith.constant dense<0.000000e+00> : vector<2x8x32xf32>
    %46 = tpu.matmul %0, %43, %cst_59 {dimension_numbers = #tpu.dot_dimension_numbers<[2], [1], [1], [2], [0, 0, 0, 1, 1, 2], [0], [0]>} : vector<2x8x8xbf16>, vector<2x8x32xbf16>, vector<2x8x32xf32> -> vector<2x8x32xf32>
    "tpu.trace_stop"() : () -> ()
    %47 = vector.shape_cast %46 : vector<2x8x32xf32> to vector<16x32xf32>
    %48 = vector.broadcast %8 : vector<1x32xf32> to vector<16x32xf32>
    %49 = arith.addf %47, %48 : vector<16x32xf32>
    "tpu.trace_start"() <{level = 10 : i32, message = "bij,bjd->bid"}> : () -> ()
    %cst_60 = arith.constant dense<0.000000e+00> : vector<2x8x32xf32>
    %50 = tpu.matmul %1, %45, %cst_60 {dimension_numbers = #tpu.dot_dimension_numbers<[2], [1], [1], [2], [0, 0, 0, 1, 1, 2], [0], [0]>} : vector<2x8x8xbf16>, vector<2x8x32xbf16>, vector<2x8x32xf32> -> vector<2x8x32xf32>
    "tpu.trace_stop"() : () -> ()
    %51 = vector.shape_cast %50 : vector<2x8x32xf32> to vector<16x32xf32>
    %52 = vector.broadcast %9 : vector<1x32xf32> to vector<16x32xf32>
    %53 = arith.addf %51, %52 : vector<16x32xf32>
    %54 = arith.truncf %49 : vector<16x32xf32> to vector<16x32xbf16>
    %55 = arith.truncf %53 : vector<16x32xf32> to vector<16x32xbf16>
    %cst_61 = arith.constant dense<0.000000e+00> : vector<16x32xf32>
    %56 = tpu.matmul %54, %11, %cst_61 {dimension_numbers = #tpu.dot_dimension_numbers<[1], [0], [0], [1], [0, 0, 1, 1], [], []>} : vector<16x32xbf16>, vector<32x32xbf16>, vector<16x32xf32> -> vector<16x32xf32>
    %cst_62 = arith.constant dense<0.000000e+00> : vector<16x32xf32>
    %57 = tpu.matmul %55, %17, %cst_62 {dimension_numbers = #tpu.dot_dimension_numbers<[1], [0], [0], [1], [0, 0, 1, 1], [], []>} : vector<16x32xbf16>, vector<32x32xbf16>, vector<16x32xf32> -> vector<16x32xf32>
    %58 = arith.addf %56, %57 : vector<16x32xf32>
    %59 = vector.broadcast %28 : vector<1x32xf32> to vector<16x32xf32>
    %60 = arith.addf %58, %59 : vector<16x32xf32>
    %cst_63 = arith.constant dense<0.000000e+00> : vector<16x32xf32>
    %61 = tpu.matmul %35, %23, %cst_63 {dimension_numbers = #tpu.dot_dimension_numbers<[1], [0], [0], [1], [0, 0, 1, 1], [], []>} : vector<16x32xbf16>, vector<32x32xbf16>, vector<16x32xf32> -> vector<16x32xf32>
    %62 = vector.broadcast %31 : vector<1x32xf32> to vector<16x32xf32>
    %63 = arith.addf %61, %62 : vector<16x32xf32>
    %cst_64 = arith.constant dense<0.000000e+00> : vector<16x32xf32>
    %64 = tpu.matmul %54, %13, %cst_64 {dimension_numbers = #tpu.dot_dimension_numbers<[1], [0], [0], [1], [0, 0, 1, 1], [], []>} : vector<16x32xbf16>, vector<32x32xbf16>, vector<16x32xf32> -> vector<16x32xf32>
    %cst_65 = arith.constant dense<0.000000e+00> : vector<16x32xf32>
    %65 = tpu.matmul %55, %19, %cst_65 {dimension_numbers = #tpu.dot_dimension_numbers<[1], [0], [0], [1], [0, 0, 1, 1], [], []>} : vector<16x32xbf16>, vector<32x32xbf16>, vector<16x32xf32> -> vector<16x32xf32>
    %66 = arith.addf %64, %65 : vector<16x32xf32>
    %67 = vector.broadcast %29 : vector<1x32xf32> to vector<16x32xf32>
    %68 = arith.addf %66, %67 : vector<16x32xf32>
    %cst_66 = arith.constant dense<0.000000e+00> : vector<16x32xf32>
    %69 = tpu.matmul %35, %25, %cst_66 {dimension_numbers = #tpu.dot_dimension_numbers<[1], [0], [0], [1], [0, 0, 1, 1], [], []>} : vector<16x32xbf16>, vector<32x32xbf16>, vector<16x32xf32> -> vector<16x32xf32>
    %70 = vector.broadcast %32 : vector<1x32xf32> to vector<16x32xf32>
    %71 = arith.addf %69, %70 : vector<16x32xf32>
    %cst_67 = arith.constant dense<0.000000e+00> : vector<16x32xf32>
    %72 = tpu.matmul %54, %15, %cst_67 {dimension_numbers = #tpu.dot_dimension_numbers<[1], [0], [0], [1], [0, 0, 1, 1], [], []>} : vector<16x32xbf16>, vector<32x32xbf16>, vector<16x32xf32> -> vector<16x32xf32>
    %cst_68 = arith.constant dense<0.000000e+00> : vector<16x32xf32>
    %73 = tpu.matmul %55, %21, %cst_68 {dimension_numbers = #tpu.dot_dimension_numbers<[1], [0], [0], [1], [0, 0, 1, 1], [], []>} : vector<16x32xbf16>, vector<32x32xbf16>, vector<16x32xf32> -> vector<16x32xf32>
    %74 = arith.addf %72, %73 : vector<16x32xf32>
    %75 = vector.broadcast %30 : vector<1x32xf32> to vector<16x32xf32>
    %76 = arith.addf %74, %75 : vector<16x32xf32>
    %cst_69 = arith.constant dense<0.000000e+00> : vector<16x32xf32>
    %77 = tpu.matmul %35, %27, %cst_69 {dimension_numbers = #tpu.dot_dimension_numbers<[1], [0], [0], [1], [0, 0, 1, 1], [], []>} : vector<16x32xbf16>, vector<32x32xbf16>, vector<16x32xf32> -> vector<16x32xf32>
    %78 = vector.broadcast %33 : vector<1x32xf32> to vector<16x32xf32>
    %79 = arith.addf %77, %78 : vector<16x32xf32>
    %80 = arith.addf %60, %63 : vector<16x32xf32>
    %81 = arith.negf %80 : vector<16x32xf32>
    %82 = math.exp %81 : vector<16x32xf32>
    %cst_70 = arith.constant 1.000000e+00 : f32
    %83 = vector.broadcast %cst_70 : f32 to vector<16x32xf32>
    %84 = arith.addf %83, %82 : vector<16x32xf32>
    %85 = arith.divf %83, %84 : vector<16x32xf32>
    %86 = arith.addf %68, %71 : vector<16x32xf32>
    %87 = arith.negf %86 : vector<16x32xf32>
    %88 = math.exp %87 : vector<16x32xf32>
    %cst_71 = arith.constant 1.000000e+00 : f32
    %89 = vector.broadcast %cst_71 : f32 to vector<16x32xf32>
    %90 = arith.addf %89, %88 : vector<16x32xf32>
    %91 = arith.divf %89, %90 : vector<16x32xf32>
    %92 = arith.mulf %85, %79 : vector<16x32xf32>
    %93 = arith.addf %76, %92 : vector<16x32xf32>
    %94 = math.tanh %93 : vector<16x32xf32>
    %95 = arith.subf %34, %94 : vector<16x32xf32>
    %96 = arith.mulf %91, %95 : vector<16x32xf32>
    %97 = arith.addf %94, %96 : vector<16x32xf32>
    %c0_72 = arith.constant 0 : index
    %c0_73 = arith.constant 0 : index
    %98 = vector.load %arg12[%c0_72, %c0_73] : memref<16x32xf32, #tpu.memory_space<vmem>>, vector<16x32xf32>
    tpu.vector_store %arg12[%c0_72, %c0_73], %97 {strides = array<i32>} : memref<16x32xf32, #tpu.memory_space<vmem>>, vector<16x32xf32>,
    return
  }
  func.func @transform_0(%arg0: i32) -> (i32, i32, i32) {
    %c0_i32 = arith.constant 0 : i32
    %c0_i32_0 = arith.constant 0 : i32
    %c0_i32_1 = arith.constant 0 : i32
    return %arg0, %c0_i32, %c0_i32_0 : i32, i32, i32
  }
  func.func @transform_1(%arg0: i32) -> (i32, i32, i32) {
    %c0_i32 = arith.constant 0 : i32
    %c0_i32_0 = arith.constant 0 : i32
    %c0_i32_1 = arith.constant 0 : i32
    return %arg0, %c0_i32, %c0_i32_0 : i32, i32, i32
  }
  func.func @transform_2(%arg0: i32) -> (i32, i32) {
    %c0_i32 = arith.constant 0 : i32
    %c0_i32_0 = arith.constant 0 : i32
    return %arg0, %c0_i32 : i32, i32
  }
  func.func @transform_3(%arg0: i32) -> (i32, i32, i32) {
    %c0_i32 = arith.constant 0 : i32
    %c0_i32_0 = arith.constant 0 : i32
    %c0_i32_1 = arith.constant 0 : i32
    %c0_i32_2 = arith.constant 0 : i32
    return %c0_i32, %c0_i32_0, %c0_i32_1 : i32, i32, i32
  }
  func.func @transform_4(%arg0: i32) -> (i32, i32) {
    %c0_i32 = arith.constant 0 : i32
    %c0_i32_0 = arith.constant 0 : i32
    %c0_i32_1 = arith.constant 0 : i32
    return %c0_i32, %c0_i32_0 : i32, i32
  }
  func.func @transform_5(%arg0: i32) -> (i32, i32) {
    %c0_i32 = arith.constant 0 : i32
    %c0_i32_0 = arith.constant 0 : i32
    %c0_i32_1 = arith.constant 0 : i32
    return %c0_i32, %c0_i32_0 : i32, i32
  }
  func.func @transform_6(%arg0: i32) -> (i32, i32, i32) {
    %c0_i32 = arith.constant 0 : i32
    %c0_i32_0 = arith.constant 0 : i32
    %c0_i32_1 = arith.constant 0 : i32
    %c0_i32_2 = arith.constant 0 : i32
    return %c0_i32, %c0_i32_0, %c0_i32_1 : i32, i32, i32
  }
  func.func @transform_7(%arg0: i32) -> (i32, i32, i32) {
    %c0_i32 = arith.constant 0 : i32
    %c0_i32_0 = arith.constant 0 : i32
    %c0_i32_1 = arith.constant 0 : i32
    %c0_i32_2 = arith.constant 0 : i32
    return %c0_i32, %c0_i32_0, %c0_i32_1 : i32, i32, i32
  }
  func.func @transform_8(%arg0: i32) -> (i32, i32) {
    %c0_i32 = arith.constant 0 : i32
    %c0_i32_0 = arith.constant 0 : i32
    %c0_i32_1 = arith.constant 0 : i32
    return %c0_i32, %c0_i32_0 : i32, i32
  }
  func.func @transform_9(%arg0: i32) -> (i32, i32, i32) {
    %c0_i32 = arith.constant 0 : i32
    %c0_i32_0 = arith.constant 0 : i32
    %c0_i32_1 = arith.constant 0 : i32
    %c0_i32_2 = arith.constant 0 : i32
    return %c0_i32, %c0_i32_0, %c0_i32_1 : i32, i32, i32
  }
  func.func @transform_10(%arg0: i32) -> (i32, i32) {
    %c0_i32 = arith.constant 0 : i32
    %c0_i32_0 = arith.constant 0 : i32
    %c0_i32_1 = arith.constant 0 : i32
    return %c0_i32, %c0_i32_0 : i32, i32
  }
  func.func @transform_11(%arg0: i32) -> (i32, i32) {
    %c0_i32 = arith.constant 0 : i32
    %c0_i32_0 = arith.constant 0 : i32
    return %arg0, %c0_i32 : i32, i32
  }
}

</mosaic_0001>

<bundles_post_ra>
// kernel: tpu_custom_call.1
= control target key start
LH: loop header
LB: loop body
LE: loop exit
PB: predicated region body
PF: predicated region fallthrough
CT: control target
= control target key end

     0   :  { %16 = vsyncpa [#allocation3], 0  ;;  %s1368_s0 = inlined_call_operand.hbm [shape: bf16[2,8,8], index: 0, kind: input, shape index: {}]   ;;  %s1369_s1 = inlined_call_operand.hbm [shape: bf16[2,8,8], index: 1, kind: input, shape index: {}]   ;;  %s1370_s2 = inlined_call_operand.hbm [shape: f32[16,32], index: 2, kind: input, shape index: {}]   ;;  %s1371_s3 = inlined_call_operand.hbm [shape: bf16[2,32,32], index: 3, kind: input, shape index: {}]   ;;  %s1372_s4 = inlined_call_operand.hbm [shape: f32[2,32], index: 4, kind: input, shape index: {}]   ;;  %s1373_s5 = inlined_call_operand.hbm [shape: f32[2,32], index: 5, kind: input, shape index: {}]   ;;  %s1374_s6 = inlined_call_operand.hbm [shape: bf16[3,32,32], index: 6, kind: input, shape index: {}]   ;;  %s1375_s7 = inlined_call_operand.hbm [shape: bf16[3,32,32], index: 7, kind: input, shape index: {}]   ;;  %s1376_s8 = inlined_call_operand.vmem [shape: f32[3,32], index: 8, kind: input, shape index: {}]   ;;  %s1377_s9 = inlined_call_operand.hbm [shape: bf16[3,32,32], index: 9, kind: input, shape index: {}]   ;;  %s1378_s10 = inlined_call_operand.vmem [shape: f32[3,32], index: 10, kind: input, shape index: {}]   ;;  %s1379_s11 = inlined_call_operand.hbm [shape: f32[16,32], index: 11, kind: output, shape index: {}]  }
   0x1   :  { %17 = vsyncpa [#allocation6], 0 }
   0x2   :  { %18 = vsyncpa [#allocation9], 0 }
   0x3   :  { %19 = vsyncpa [#allocation12], 0 }
   0x4   :  { %20 = vsyncpa [#allocation15], 0 }
   0x5   :  { %21 = vsyncpa [#allocation4], 0  ;;  %s39_s19 = sshll.u32 %s1369_s1, 4  ;;  %s1186_s20 = smov [#allocation5]   ;;  %s40_s19 = int_to_ptr.hbm [resolvable:$true] %s39_s19 }
   0x6   :  { %s41_s21 = sshll.u32 %s1186_s20, 4  ;;  %s65_s24 = sshll.u32 %s1371_s3, 4  ;;  %s42_s21 = int_to_ptr.vmem [resolvable:$true] %s41_s21  ;;  %s66_s24 = int_to_ptr.hbm [resolvable:$true] %s65_s24 }
   0x7   :  { %s1187_s25 = smov 64   ;;  %s1188_s26 = smov 4  }
   0x8   :  { %47 = dma.hbm_to_vmem [thread:$0]  %s40_s19, 128, %s42_s21, [#allocation6], %s1187_s25, %s1187_s25, %s1188_s26  }
   0x9   :  { %s1189_s27 = smov [#allocation8]   ;;  %s90_s1 = sshll.u32 %s1373_s5, 4  ;;  %s91_s1 = int_to_ptr.hbm [resolvable:$true] %s90_s1 }
   0xa   :  { %s67_s28 = sshll.u32 %s1189_s27, 4  ;;  %s113_s13 = sshll.u32 %s1375_s7, 4  ;;  %s68_s28 = int_to_ptr.vmem [resolvable:$true] %s67_s28  ;;  %s114_s13 = int_to_ptr.hbm [resolvable:$true] %s113_s13 }
   0xb   :  { %73 = dma.hbm_to_vmem [thread:$0]  %s66_s24, 512, %s68_s28, [#allocation9], %s1187_s25, %s1187_s25, %s1188_s26  }
   0xc   :  { %s1190_s14 = smov [#allocation11]   ;;  %s1191_s16 = smov [#allocation14]  }
   0xd   :  { %s92_s15 = sshll.u32 %s1190_s14, 4  ;;  %s115_s17 = sshll.u32 %s1191_s16, 4  ;;  %s93_s15 = int_to_ptr.vmem [resolvable:$true] %s92_s15  ;;  %s116_s17 = int_to_ptr.vmem [resolvable:$true] %s115_s17 }
   0xe   :  { %95 = dma.hbm_to_vmem [thread:$0]  %s91_s1, 32, %s93_s15, [#allocation12]  }
   0xf   :  { %s26_s5 = sshll.u32 %s1368_s0, 4  ;;  %s52_s7 = sshll.u32 %s1370_s2, 4  ;;  %s27_s5 = int_to_ptr.hbm [resolvable:$true] %s26_s5  ;;  %s53_s7 = int_to_ptr.hbm [resolvable:$true] %s52_s7 }
  0x10   :  { %121 = dma.hbm_to_vmem [thread:$0]  %s114_s13, 768, %s116_s17, [#allocation15], %s1187_s25, %s1187_s25, %s1188_s26  }
  0x11   :  { %s1192_s22 = smov [#allocation2]   ;;  %s1193_s24 = smov [#allocation7]  }
  0x12   :  { %s28_s23 = sshll.u32 %s1192_s22, 4  ;;  %s54_s0 = sshll.u32 %s1193_s24, 4  ;;  %s29_s23 = int_to_ptr.vmem [resolvable:$true] %s28_s23  ;;  %s55_s0 = int_to_ptr.vmem [resolvable:$true] %s54_s0 }
  0x13   :  { %34 = dma.hbm_to_vmem [thread:$0]  %s27_s5, 128, %s29_s23, [#allocation3], %s1187_s25, %s1187_s25, %s1188_s26  }
  0x14   :  { %s1194_s27 = smov 128   ;;  %s1195_s28 = smov 8  }
  0x15   :  { %60 = dma.hbm_to_vmem [thread:$0]  %s53_s7, 256, %s55_s0, [#allocation6], %s1194_s27, %s1194_s27, %s1195_s28  }
  0x16   :  { %s79_s2 = sshll.u32 %s1372_s4, 4  ;;  %s1196_s1 = smov [#allocation10]   ;;  %s80_s2 = int_to_ptr.hbm [resolvable:$true] %s79_s2 }
  0x17   :  { %s81_s3 = sshll.u32 %s1196_s1, 4  ;;  %s100_s14 = sshll.u32 %s1374_s6, 4  ;;  %s82_s3 = int_to_ptr.vmem [resolvable:$true] %s81_s3  ;;  %s101_s14 = int_to_ptr.hbm [resolvable:$true] %s100_s14 }
  0x18   :  { %84 = dma.hbm_to_vmem [thread:$0]  %s80_s2, 32, %s82_s3, [#allocation9]  }
  0x19   :  { %s1197_s15 = smov [#allocation13]   ;;  %s128_s19 = sshll.u32 %s1377_s9, 4  ;;  %s129_s19 = int_to_ptr.hbm [resolvable:$true] %s128_s19 }
  0x1a   :  { %s102_s16 = sshll.u32 %s1197_s15, 4  ;;  %s1198_s4 = smov [#allocation16]   ;;  %s103_s16 = int_to_ptr.vmem [resolvable:$true] %s102_s16 }
  0x1b   :  { %108 = dma.hbm_to_vmem [thread:$0]  %s101_s14, 768, %s103_s16, [#allocation12], %s1187_s25, %s1187_s25, %s1188_s26  }
  0x1c   :  { %s130_s5 = sshll.u32 %s1198_s4, 4  ;;  %s131_s5 = int_to_ptr.vmem [resolvable:$true] %s130_s5 }
  0x1d   :  { %136 = dma.hbm_to_vmem [thread:$0]  %s129_s19, 768, %s131_s5, [#allocation15], %s1187_s25, %s1187_s25, %s1188_s26  }
  0x1e   :  { %1174 = dma.done.wait [#allocation3], 128  }
  0x1f   :  { %1175 = vsyncadd [#allocation3], 4294967168 }
  0x20   :  { %1176 = dma.done.wait [#allocation6], 384  }
  0x21   :  { %1177 = vsyncadd [#allocation6], 4294966912 }
  0x22   :  { %1178 = dma.done.wait [#allocation9], 544  }
  0x23   :  { %1179 = vsyncadd [#allocation9], 4294966752 }
  0x24   :  { %1180 = dma.done.wait [#allocation12], 800  }
  0x25   :  { %1181 = vsyncadd [#allocation12], 4294966496 }
  0x26   :  { %1182 = dma.done.wait [#allocation15], 1536  }
  0x27   :  { %1183 = vsyncadd [#allocation15], 4294965760  ;;  %v869_v0 = vld [vmem:[#allocation8 + $0x8] sm:$0xff]  ;;  %v871_v1 = vld [vmem:[#allocation8 + $0x18] sm:$0xff]  ;;  %vm257_vm0 = vcmask 261120   ;;  %vm310_vm1 = vcmask 1043456  }
  0x28   :  { %v868_v2 = vld [vmem:[#allocation8] sm:$0xff]  ;;  %v870_v3 = vld [vmem:[#allocation8 + $0x10] sm:$0xff]  ;;  %267 = vmatpush.bf16.msra.mxu0 %v869_v0  ;;  %294 = vmatpush.bf16.msra.mxu1 %v871_v1  ;;  %v1310_v5 = vld [vmem:[#allocation7 + $0x8] sm:$0xff]  ;;  %vm306_vm2 = vcmask 64512   ;;  %s744_s1 = sshll.u32 %s1379_s11, 4  ;;  %s745_s1 = int_to_ptr.hbm [resolvable:$true] %s744_s1 }
  0x29   :  { %v1308_v4 = vld [vmem:[#allocation7] sm:$0xff]  ;;  %v904_v7 = vld [vmem:[#allocation10] ss:$0 sm:$0xff]  ;;  %v905_v8 = vld [vmem:[#allocation10 + $0x1] ss:$0 sm:$0xff] }
  0x2a   :  { %v1314_v6 = vpack.c.bf16 %v1310_v5, %v1308_v4  ;;  %v176_v17 = vld [vmem:[#allocation2] sm:$0xf]  ;;  %v177_v26 = vld [vmem:[#allocation2 + $0x4] sm:$0xf]  ;;  %v178_v27 = vld [vmem:[#allocation5] sm:$0xf] }
  0x2b   :  { %v179_v28 = vld [vmem:[#allocation5 + $0x4] sm:$0xf]  ;;  %v872_v31 = vld [vmem:[#allocation13] sm:$0xff]  ;;  %v879_v33 = vld [vmem:[#allocation14 + $0x8] sm:$0xff] }
  0x2c   :  { %268 = vmatpush.bf16.msra.mxu0 %v868_v2  ;;  %295 = vmatpush.bf16.msra.mxu1 %v870_v3  ;;  %v873_v29 = vld [vmem:[#allocation13 + $0x8] sm:$0xff]  ;;  %v884_v32 = vld [vmem:[#allocation16] sm:$0xff]  ;;  %v878_v34 = vld [vmem:[#allocation14] sm:$0xff] }
  0x2d   :  { %v885_v30 = vld [vmem:[#allocation16 + $0x8] sm:$0xff]  ;;  %v883_v36 = vld [vmem:[#allocation14 + $0x28] sm:$0xff]  ;;  %v880_v37 = vld [vmem:[#allocation14 + $0x10] sm:$0xff] }
  0x2e   :  { %v881_v35 = vld [vmem:[#allocation14 + $0x18] sm:$0xff]  ;;  %v882_v38 = vld [vmem:[#allocation14 + $0x20] sm:$0xff]  ;;  %v875_v39 = vld [vmem:[#allocation13 + $0x18] sm:$0xff] }
  0x2f   :  { %769 = vmatmul.msk.bf16.vlgmr.msra.gmra.mxu0 %vm257_vm0, %v1314_v6  ;;  %778 = vmatmul.msk.bf16.vlgmr.msra.gmra.mxu1 %vm257_vm0, %v1314_v6  ;;  %v887_v40 = vld [vmem:[#allocation16 + $0x18] sm:$0xff]  ;;  %v886_v42 = vld [vmem:[#allocation16 + $0x10] sm:$0xff]  ;;  %v877_v44 = vld [vmem:[#allocation13 + $0x28] sm:$0xff] }
  0x30   :  { %442 = vmatpush.bf16.msrb.mxu1 %v873_v29  ;;  %413 = vmatpush.bf16.msrb.mxu0 %v879_v33  ;;  %v874_v43 = vld [vmem:[#allocation13 + $0x10] sm:$0xff]  ;;  %v876_v45 = vld [vmem:[#allocation13 + $0x20] sm:$0xff]  ;;  %v906_v46 = vld [vmem:[#allocation11] ss:$0 sm:$0xff] }
  0x31   :  { %v907_v54 = vld [vmem:[#allocation11 + $0x1] ss:$0 sm:$0xff]  ;;  %v889_v60 = vld [vmem:[#allocation16 + $0x28] sm:$0xff]  ;;  %v888_v61 = vld [vmem:[#allocation16 + $0x20] sm:$0xff] }
  0x32   :  { %v908_v0 = vld [vmem:[%s1378_s10] ss:$0 sm:$0xff] }
  0x33   :  { %v909_v1 = vld [vmem:[%s1376_s8] ss:$0 sm:$0xff] }
  0x34   :  { %443 = vmatpush.bf16.msrb.mxu1 %v872_v31  ;;  %414 = vmatpush.bf16.msrb.mxu0 %v878_v34 }
  0x38   :  { %524 = vmatpush.bf16.msra.mxu0 %v875_v39  ;;  %554 = vmatpush.bf16.msra.mxu1 %v887_v40 }
  0x3c   :  { %525 = vmatpush.bf16.msra.mxu0 %v874_v43  ;;  %555 = vmatpush.bf16.msra.mxu1 %v886_v42 }
  0xac   :  { %v270_v9 = vpop.f32.mrf.mxu0  ;;  %v297_v10 = vpop.f32.mrf.mxu1 }
  0xad   :  { %v271_v11 = vadd.f32 %v904_v7, %v270_v9  ;;  %v298_v12 = vadd.f32 %v905_v8, %v297_v10 }
  0xaf   :  { %v302_v13 = vpack.c.bf16 %v271_v11, %v271_v11  ;;  %v304_v14 = vpack.c.bf16 %v298_v12, %v298_v12 }
  0xb1   :  { %v312_v15 = vsel %vm310_vm1, %v302_v13, 0  ;;  %v353_v16 = vsel %vm310_vm1, %v304_v14, 0 }
  0xb2   :  { %321 = vmatpush.bf16.msra.mxu2 %v312_v15 }
  0xb4   :  { %v272_v18 = vpop.f32.mrf.mxu0  ;;  %v299_v19 = vpop.f32.mrf.mxu1 }
  0xb5   :  { %v273_v20 = vadd.f32 %v904_v7, %v272_v18  ;;  %v300_v21 = vadd.f32 %v905_v8, %v299_v19  ;;  %779 = vmatmul.msk.bf16.vlgmr.msra.gmra.mxu2 %vm306_vm2, %v176_v17  ;;  %v910_v19 = vld [vmem:[%s1378_s10 + $0x1] ss:$0 sm:$0xff] }
  0xb6   :  { %362 = vmatpush.bf16.msrb.mxu2 %v353_v16 }
  0xb7   :  { %v303_v22 = vpack.c.bf16 %v273_v20, %v273_v20  ;;  %v305_v23 = vpack.c.bf16 %v300_v21, %v300_v21 }
  0xb9   :  { %v331_v24 = vsel %vm310_vm1, %v303_v22, 0  ;;  %v372_v25 = vsel %vm310_vm1, %v305_v23, 0  ;;  %v911_v23 = vld [vmem:[%s1376_s8 + $0x1] ss:$0 sm:$0xff] }
  0xba   :  { %340 = vmatpush.bf16.msra.mxu3 %v331_v24  ;;  %472 = vmatpush.bf16.msra.mxu2 %v885_v30 }
  0xbd   :  { %780 = vmatmul.msk.bf16.vlgmr.msra.gmra.mxu3 %vm306_vm2, %v177_v26 }
  0xbe   :  { %381 = vmatpush.bf16.msrb.mxu3 %v372_v25  ;;  %473 = vmatpush.bf16.msra.mxu2 %v884_v32 }
  0xc2   :  { %498 = vmatpush.bf16.msra.mxu3 %v881_v35 }
  0xc5   :  { %781 = vmatmul.msk.bf16.vlgmr.msrb.gmra.mxu2 %vm306_vm2, %v178_v27 }
  0xc6   :  { %580 = vmatpush.bf16.msrb.mxu2 %v883_v36  ;;  %499 = vmatpush.bf16.msra.mxu3 %v880_v37 }
  0xca   :  { %581 = vmatpush.bf16.msrb.mxu2 %v882_v38 }
  0xcd   :  { %782 = vmatmul.msk.bf16.vlgmr.msrb.gmra.mxu3 %vm306_vm2, %v179_v28 }
  0xce   :  { %606 = vmatpush.bf16.msrb.mxu3 %v877_v44 }
  0xd2   :  { %607 = vmatpush.bf16.msrb.mxu3 %v876_v45 }
  0xd5   :  { %809 = vmatmul.msk.bf16.vlgmr.msra.gmra.mxu2 %vm257_vm0, %v1314_v6 }
 0x138   :  { %v323_v41 = vpop.f32.mrf.mxu2 }
 0x139   :  { %v347_v47 = vadd.f32 %v906_v46, %v323_v41 }
 0x140   :  { %v325_v48 = vpop.f32.mrf.mxu2  ;;  %v342_v49 = vpop.f32.mrf.mxu3 }
 0x141   :  { %v348_v50 = vadd.f32 %v906_v46, %v342_v49  ;;  %v913_v46 = vld [vmem:[%s1378_s10 + $0x2] ss:$0 sm:$0xff] }
 0x143   :  { %v390_v51 = vpack.c.bf16 %v348_v50, %v347_v47 }
 0x145   :  { %800 = vmatmul.msk.bf16.vlgmr.msrb.gmra.mxu1 %vm257_vm0, %v390_v51 }
 0x148   :  { %v344_v52 = vpop.f32.mrf.mxu3  ;;  %v364_v53 = vpop.f32.mrf.mxu2 }
 0x149   :  { %v388_v55 = vadd.f32 %v907_v54, %v364_v53 }
 0x150   :  { %v366_v56 = vpop.f32.mrf.mxu2  ;;  %v383_v57 = vpop.f32.mrf.mxu3 }
 0x151   :  { %v389_v58 = vadd.f32 %v907_v54, %v383_v57 }
 0x153   :  { %v391_v59 = vpack.c.bf16 %v389_v58, %v388_v55 }
 0x155   :  { %791 = vmatmul.msk.bf16.vlgmr.msrb.gmra.mxu0 %vm257_vm0, %v391_v59  ;;  %818 = vmatmul.msk.bf16.vlgmr.msra.gmra.mxu3 %vm257_vm0, %v391_v59 }
 0x156   :  { %845 = vmatmul.msk.bf16.vlgmr.msrb.gmra.mxu2 %vm257_vm0, %v391_v59  ;;  %836 = vmatmul.msk.bf16.vlgmr.msra.gmra.mxu1 %vm257_vm0, %v1314_v6 }
 0x157   :  { %636 = vmatpush.bf16.msrb.mxu0 %v889_v60 }
 0x158   :  { %v385_v62 = vpop.f32.mrf.mxu3  ;;  %v475_v2 = vpop.f32.mrf.mxu2 }
 0x159   :  { %v476_v7 = vadd.f32 %v908_v0, %v475_v2 }
 0x15b   :  { %637 = vmatpush.bf16.msrb.mxu0 %v888_v61 }
 0x160   :  { %v477_v15 = vpop.f32.mrf.mxu2 }
 0x161   :  { %v478_v16 = vadd.f32 %v908_v0, %v477_v15 }
 0x165   :  { %827 = vmatmul.msk.bf16.vlgmr.msra.gmra.mxu0 %vm257_vm0, %v390_v51  ;;  %854 = vmatmul.msk.bf16.vlgmr.msrb.gmra.mxu3 %vm257_vm0, %v390_v51  ;;  %v912_v51 = vld [vmem:[%s1376_s8 + $0x2] ss:$0 sm:$0xff]  ;;  %s1199_s8 = smov [#allocation17]  }
 0x166   :  { %s742_s10 = sshll.u32 %s1199_s8, 4  ;;  %s743_s10 = int_to_ptr.vmem [resolvable:$true] %s742_s10 }
 0x175   :  { %863 = vmatmul.msk.bf16.vlgmr.msrb.gmra.mxu0 %vm257_vm0, %v1314_v6 }
 0x1c2   :  { %v445_v63 = vpop.f32.mrf.mxu1 }
 0x1ca   :  { %v447_v11 = vpop.f32.mrf.mxu1 }
 0x1d2   :  { %v416_v3 = vpop.f32.mrf.mxu0 }
 0x1d3   :  { %v446_v8 = vadd.f32 %v445_v63, %v416_v3  ;;  %v557_v20 = vpop.f32.mrf.mxu1 }
 0x1d4   :  { %v558_v26 = vadd.f32 %v910_v19, %v557_v20 }
 0x1d5   :  { %v451_v9 = vadd.f32 %v909_v1, %v446_v8 }
 0x1d7   :  { %v644_v10 = vadd.f32 %v476_v7, %v451_v9 }
 0x1d8   :  { %v501_v13 = vpop.f32.mrf.mxu3 }
 0x1d9   :  { %v864_v12 = vmul.f32 -1.442695, %v644_v10  ;;  %v583_v44 = vpop.f32.mrf.mxu2 }
 0x1da   :  { %v418_v14 = vpop.f32.mrf.mxu0 }
 0x1db   :  { %914 = vpow2.f32 %v864_v12  ;;  %v448_v6 = vadd.f32 %v447_v11, %v418_v14  ;;  %v559_v35 = vpop.f32.mrf.mxu1 }
 0x1dc   :  { %v560_v39 = vadd.f32 %v910_v19, %v559_v35 }
 0x1dd   :  { %v452_v17 = vadd.f32 %v909_v1, %v448_v6 }
 0x1df   :  { %v645_v18 = vadd.f32 %v478_v16, %v452_v17 }
 0x1e0   :  { %v503_v27 = vpop.f32.mrf.mxu3 }
 0x1e1   :  { %v915_v21 = vpop.eup %914  ;;  %v865_v22 = vmul.f32 -1.442695, %v645_v18  ;;  %v585_v10 = vpop.f32.mrf.mxu2 }
 0x1e2   :  { %v652_v24 = vadd.f32 1.0, %v915_v21  ;;  %v527_v25 = vpop.f32.mrf.mxu0 }
 0x1e3   :  { %916 = vpow2.f32 %v865_v22  ;;  %v528_v28 = vadd.f32 %v527_v25, %v501_v13 }
 0x1e4   :  { %918 = vrcp.f32 %v652_v24  ;;  %v665_v43 = vand.u32 2147483648, %v652_v24  ;;  %v663_v48 = vand.u32 2147483647, %v652_v24  ;;  %vm659_vm4 = vweird.f32 %v652_v24 }
 0x1e5   :  { %v533_v29 = vadd.f32 %v911_v23, %v528_v28 }
 0x1e6   :  { %v666_v57 = vor.u32 1.1754944e-38, %v665_v43  ;;  %vm664_vm6 = vcmp.eq.f32.partialorder %v663_v48, 8.507059e+37 }
 0x1e7   :  { %v684_v30 = vadd.f32 %v558_v26, %v533_v29 }
 0x1e8   :  { %v609_v40 = vpop.f32.mrf.mxu3 }
 0x1e9   :  { %v917_v31 = vpop.eup %916  ;;  %v866_v32 = vmul.f32 -1.442695, %v684_v30  ;;  %v610_v50 = vadd.f32 %v609_v40, %v583_v44 }
 0x1ea   :  { %v919_v33 = vpop.eup %918  ;;  %v653_v34 = vadd.f32 1.0, %v917_v31  ;;  %v529_v36 = vpop.f32.mrf.mxu0 }
 0x1eb   :  { %920 = vpow2.f32 %v866_v32  ;;  %v530_v37 = vadd.f32 %v529_v36, %v503_v27  ;;  %v655_v38 = vmul.f32 %v919_v33, %v652_v24  ;;  %vm660_vm3 = vweird.f32 %v919_v33 }
 0x1ec   :  { %922 = vrcp.f32 %v653_v34  ;;  %vm661_vm5 = vmor %vm659_vm4, %vm660_vm3  ;;  %v615_v62 = vadd.f32 %v912_v51, %v610_v50  ;;  %v680_v3 = vand.u32 2147483648, %v653_v34  ;;  %v678_v8 = vand.u32 2147483647, %v653_v34 }
 0x1ed   :  { %v534_v41 = vadd.f32 %v911_v23, %v530_v37  ;;  %v656_v42 = vsub.f32 1.0, %v655_v38  ;;  %vm674_vm8 = vweird.f32 %v653_v34 }
 0x1ee   :  { %v681_v17 = vor.u32 1.1754944e-38, %v680_v3  ;;  %vm679_vm10 = vcmp.eq.f32.partialorder %v678_v8, 8.507059e+37 }
 0x1ef   :  { %v685_v45 = vadd.f32 %v560_v39, %v534_v41  ;;  %v657_v47 = vmul.f32 %v919_v33, %v656_v42 }
 0x1f0   :  { %v611_v1 = vpop.f32.mrf.mxu3 }
 0x1f1   :  { %v921_v49 = vpop.eup %920  ;;  %v867_v52 = vmul.f32 -1.442695, %v685_v45  ;;  %v658_v53 = vadd.f32 %v919_v33, %v657_v47  ;;  %v612_v13 = vadd.f32 %v611_v1, %v585_v10 }
 0x1f2   :  { %v923_v54 = vpop.eup %922  ;;  %v692_v55 = vadd.f32 1.0, %v921_v49  ;;  %v639_v56 = vpop.f32.mrf.mxu0 }
 0x1f3   :  { %924 = vpow2.f32 %v867_v52  ;;  %v640_v58 = vadd.f32 %v913_v46, %v639_v56  ;;  %v662_v59 = vsel %vm661_vm5, %v919_v33, %v658_v53  ;;  %v670_v61 = vmul.f32 %v923_v54, %v653_v34 }
 0x1f4   :  { %926 = vrcp.f32 %v692_v55  ;;  %v667_v60 = vsel %vm664_vm6, %v666_v57, %v662_v59  ;;  %vm675_vm7 = vweird.f32 %v923_v54  ;;  %v616_v21 = vadd.f32 %v912_v51, %v612_v13 }
 0x1f5   :  { %v724_v63 = vmul.f32 %v667_v60, %v640_v58  ;;  %v671_v0 = vsub.f32 1.0, %v670_v61  ;;  %vm676_vm9 = vmor %vm674_vm8, %vm675_vm7  ;;  %v705_v23 = vand.u32 2147483648, %v692_v55  ;;  %v703_v25 = vand.u32 2147483647, %v692_v55 }
 0x1f6   :  { %vm699_vm12 = vweird.f32 %v692_v55 }
 0x1f7   :  { %v726_v2 = vadd.f32 %v724_v63, %v615_v62  ;;  %v672_v7 = vmul.f32 %v923_v54, %v671_v0  ;;  %v706_v30 = vor.u32 1.1754944e-38, %v705_v23  ;;  %vm704_vm14 = vcmp.eq.f32.partialorder %v703_v25, 8.507059e+37 }
 0x1f9   :  { %v925_v9 = vpop.eup %924  ;;  %928 = vtanh.f32 %v726_v2  ;;  %v673_v6 = vadd.f32 %v923_v54, %v672_v7 }
 0x1fa   :  { %v927_v11 = vpop.eup %926  ;;  %v693_v12 = vadd.f32 1.0, %v925_v9  ;;  %v641_v14 = vpop.f32.mrf.mxu0 }
 0x1fb   :  { %v695_v15 = vmul.f32 %v927_v11, %v692_v55  ;;  %v642_v16 = vadd.f32 %v913_v46, %v641_v14  ;;  %v677_v18 = vsel %vm676_vm9, %v923_v54, %v673_v6  ;;  %vm700_vm11 = vweird.f32 %v927_v11 }
 0x1fc   :  { %930 = vrcp.f32 %v693_v12  ;;  %v682_v20 = vsel %vm679_vm10, %v681_v17, %v677_v18  ;;  %vm701_vm13 = vmor %vm699_vm12, %vm700_vm11  ;;  %v720_v37 = vand.u32 2147483648, %v693_v12  ;;  %v718_v39 = vand.u32 2147483647, %v693_v12 }
 0x1fd   :  { %v696_v19 = vsub.f32 1.0, %v695_v15  ;;  %v725_v22 = vmul.f32 %v682_v20, %v642_v16  ;;  %vm714_vm1 = vweird.f32 %v693_v12 }
 0x1fe   :  { %v721_v43 = vor.u32 1.1754944e-38, %v720_v37  ;;  %vm719_vm3 = vcmp.eq.f32.partialorder %v718_v39, 8.507059e+37 }
 0x1ff   :  { %v697_v24 = vmul.f32 %v927_v11, %v696_v19  ;;  %v929_v26 = vpop.eup %928  ;;  %v727_v27 = vadd.f32 %v725_v22, %v616_v21 }
 0x200   :  { %v730_v32 = vsub.f32 %v1308_v4, %v929_v26 }
 0x201   :  { %v698_v28 = vadd.f32 %v927_v11, %v697_v24  ;;  %932 = vtanh.f32 %v727_v27 }
 0x202   :  { %v931_v29 = vpop.eup %930 }
 0x203   :  { %v710_v31 = vmul.f32 %v931_v29, %v693_v12  ;;  %v702_v33 = vsel %vm701_vm13, %v927_v11, %v698_v28  ;;  %vm715_vm15 = vweird.f32 %v931_v29 }
 0x204   :  { %v707_v34 = vsel %vm704_vm14, %v706_v30, %v702_v33  ;;  %vm716_vm2 = vmor %vm714_vm1, %vm715_vm15 }
 0x205   :  { %v711_v35 = vsub.f32 1.0, %v710_v31  ;;  %v732_v36 = vmul.f32 %v730_v32, %v707_v34 }
 0x207   :  { %v712_v38 = vmul.f32 %v931_v29, %v711_v35  ;;  %v734_v40 = vadd.f32 %v929_v26, %v732_v36  ;;  %v933_v41 = vpop.eup %932 }
 0x208   :  { %v731_v44 = vsub.f32 %v1310_v5, %v933_v41 }
 0x209   :  { %v713_v42 = vadd.f32 %v931_v29, %v712_v38  ;;  %736 = vst.msk [vmem:[#allocation17] sm:$0xff] %vm257_vm0, %v734_v40 }
 0x20b   :  { %v717_v4 = vsel %vm716_vm2, %v931_v29, %v713_v42 }
 0x20c   :  { %v722_v45 = vsel %vm719_vm3, %v721_v43, %v717_v4 }
 0x20d   :  { %v733_v46 = vmul.f32 %v731_v44, %v722_v45 }
 0x20f   :  { %v735_v47 = vadd.f32 %v933_v41, %v733_v46 }
 0x211   :  { %737 = vst.msk [vmem:[#allocation17 + $0x8] sm:$0xff] %vm257_vm0, %v735_v47 }
 0x212   :  { %750 = dma.vmem_to_hbm [thread:$0]  %s743_s10, 256, %s745_s1, [#allocation4], %s1194_s27, %s1194_s27, %s1195_s28  }
 0x213   :  { %1184 = dma.done.wait [#allocation4], 256  }
 0x214   :  { %1185 = vsyncadd [#allocation4], 4294967040 }
 0x215   :  { %755 = vsyncpa [#allocation3], 1 }
 0x216   :  { %756 = vsyncpa [#allocation6], 1 }
 0x217   :  { %757 = vsyncpa [#allocation9], 1 }
 0x218   :  { %758 = vsyncpa [#allocation12], 1 }
 0x219   :  { %759 = vsyncpa [#allocation15], 1 }
 0x21a   :  { %760 = vsyncpa [#allocation4], 1 }

</bundles_post_ra>
